<compile_context>
chip_gen: v7x
topology: tpu7x:2x2x1
jax: 0.10.0
libtpu: 0.0.40
codegen_flags: <defaults>
</compile_context>

<pallas_src>
import functools

import jax
import jax.numpy as jnp
from jax.experimental import pallas as pl
from jax.experimental.pallas import tpu as pltpu


FEAT_PAD = 8       # features (7) padded to 8 on the sublane axis
PARAM_LANES = 128  # packed parameter slab width (one aligned (8,128) tile)

# Packed-parameter slab layout (columns of the [8,128] f32 array):
#   [ 0: 8)  W1   (4x7, zero padded)     Hidden1  7->4
#   [ 8:16)  W23  (4x4, = W3 @ W2)       fused Hidden2+Hidden3  4->4
#   [16:24)  W4   (7x4, zero padded)     Hidden4  4->7
#   [24]     b1   [25] b23   [26] b4     bias columns
_W1_COL, _W23_COL, _W4_COL = 0, 8, 16
_B1_COL, _B23_COL, _B4_COL = 24, 25, 26


def _dense_fm(x, w, b, in_dim, relu):
    """Feature-major dense layer on the VPU.

    x: [8, TB] activations (rows = features, cols = batch lanes)
    w: [8, 8] zero-padded weights, w[o, i] == torch_weight[o, i]
    b: [8, 1] zero-padded bias column
    y[o, l] = sum_i w[o, i] * x[i, l] + b[o], unrolled over the tiny static contraction
    dim as [8,1] x [1,TB] broadcast FMAs -- full [8, TB] vreg tiles, no MXU.
    """
    acc = jnp.broadcast_to(b, x.shape)
    for i in range(in_dim):  # static unroll; in_dim is 7 / 4 / 4
        acc = acc + w[:, i:i + 1] * x[i:i + 1, :]
    if relu:
        acc = jnp.maximum(acc, 0.0)
    return acc


def _autoencoder_kernel(x_ref, p_ref, o_ref):
    """Whole forward pass (3 fused dense layers + 2 ReLUs), feature-major."""
    x = x_ref[...]                         # [8, TB] f32

    # Static ref slices (zero-cost views) into the resident parameter slab.
    w1 = p_ref[:, _W1_COL:_W1_COL + 8]
    w23 = p_ref[:, _W23_COL:_W23_COL + 8]
    w4 = p_ref[:, _W4_COL:_W4_COL + 8]
    b1 = p_ref[:, _B1_COL:_B1_COL + 1]
    b23 = p_ref[:, _B23_COL:_B23_COL + 1]
    b4 = p_ref[:, _B4_COL:_B4_COL + 1]

    h1 = _dense_fm(x, w1, b1, in_dim=7, relu=True)     # Hidden1 + ReLU
    h3 = _dense_fm(h1, w23, b23, in_dim=4, relu=True)  # fused Hidden2+Hidden3 + ReLU
    y = _dense_fm(h3, w4, b4, in_dim=4, relu=False)    # Hidden4

    o_ref[...] = y.astype(o_ref.dtype)


def _cdiv(a, b):
    return -(-a // b)


def _round_up(n, m):
    return ((n + m - 1) // m) * m


def _choose_tiling(batch, target_tb=32768):
    """Pick (tb, b_pad, n_steps): lane-tile width, padded batch, grid length.

    - tb is a multiple of 128, at most ~target_tb (1 MiB blocks at 32768).
    - padding waste is < n_steps*128 lanes (decoupled from tb).
    - when the batch is big enough, force >=2 (prefer 4, even) grid steps so the
      "parallel" grid axis can be sharded over v7x's two TensorCores.
    """
    b128 = _round_up(max(batch, 1), 128)
    n = max(_cdiv(b128, target_tb), 1)
    if b128 >= 4 * 128:
        n = max(n, 4)
    elif b128 >= 2 * 128:
        n = max(n, 2)
    if n > 1 and n % 2:
        n += 1
    tb = _round_up(_cdiv(b128, n), 128)
    return tb, n * tb, n


def pack_params(params):
    """torch-convention params -> single [8,128] f32 resident parameter slab.

    Hidden2 (4->2) and Hidden3 (2->4) have no nonlinearity between them, so they are
    fused exactly: W23 = W3 @ W2, b23 = W3 @ b2 + b3 (full f32 precision).
    """
    hi = jax.lax.Precision.HIGHEST
    w1, b1 = params["w1"], params["b1"]                              # (4,7), (4,)
    w23 = jnp.dot(params["w3"], params["w2"], precision=hi)          # (4,4)
    b23 = jnp.dot(params["w3"], params["b2"], precision=hi) + params["b3"]  # (4,)
    w4, b4 = params["w4"], params["b4"]                              # (7,4), (7,)

    p = jnp.zeros((FEAT_PAD, PARAM_LANES), jnp.float32)
    for w, col in ((w1, _W1_COL), (w23, _W23_COL), (w4, _W4_COL)):
        o, i = w.shape
        p = p.at[:o, col:col + i].set(w.astype(jnp.float32))
    for b, col in ((b1, _B1_COL), (b23, _B23_COL), (b4, _B4_COL)):
        p = p.at[:b.shape[0], col].set(b.astype(jnp.float32))
    return p


def _forward_core(xt, packed_params, tb, n_steps,
                  *, vmem_limit_bytes=32 * 1024 * 1024):
    """xt: [8, n_steps*tb] f32 feature-major activations. Returns same shape."""
    b_pad = xt.shape[1]
    assert xt.shape[0] == FEAT_PAD and b_pad == tb * n_steps

    # Activations tile along the batch (lane) axis; the parameter slab is resident
    # (constant index_map -> fetched once). Default double buffering is enough at
    # 1-2 MiB tiles; do not add pl.Buffered(3), do not use the MXU for K/N of 4-7.
    act_spec = pl.BlockSpec((FEAT_PAD, tb), lambda i: (0, i))
    prm_spec = pl.BlockSpec((FEAT_PAD, PARAM_LANES), lambda i: (0, 0))

    cost = pl.CostEstimate(
        flops=2 * (7 * 4 + 4 * 4 + 4 * 7) * b_pad,                 # ~144 flops/row
        transcendentals=0,
        bytes_accessed=2 * FEAT_PAD * b_pad * 4 + FEAT_PAD * PARAM_LANES * 4,
    )

    return pl.pallas_call(
        _autoencoder_kernel,
        out_shape=jax.ShapeDtypeStruct((FEAT_PAD, b_pad), jnp.float32),
        grid=(n_steps,),
        in_specs=[act_spec, prm_spec],
        out_specs=act_spec,
        compiler_params=pltpu.CompilerParams(
            dimension_semantics=("parallel",),   # shard grid steps over v7x's 2 TCs
            vmem_limit_bytes=vmem_limit_bytes,   # ample headroom on v7x's 64 MiB VMEM
        ),
        cost_estimate=cost,
    )(xt, packed_params)


def autoencoder_forward_fm(xt, packed_params, *, target_tb=32768):
    """Zero-layout-overhead path for feature-major pipelines.

    xt: [8, width] f32 (rows 0..6 = features, batch on the 128-wide lane axis),
    width a multiple of 128. Returns [8, width]. Only pads further if the chosen
    tiling requires it (waste < n_steps*128 lanes).
    """
    f, width = xt.shape
    assert f == FEAT_PAD and width % 128 == 0
    tb, b_pad, n = _choose_tiling(width, target_tb)
    if b_pad != width:
        xt = jnp.pad(xt, ((0, 0), (0, b_pad - width)))
    out = _forward_core(xt, packed_params, tb, n)
    return out[:, :width] if b_pad != width else out


def autoencoder_forward(x, params, *, target_tb=32768):
    """Batch-major convenience wrapper matching the PyTorch module interface.

    x: [B, 7] float32; params: torch-convention weights (out,in) and biases (out,).
    Uses a single fused pad+transpose into the feature-major layout (and one
    slice+transpose back). For repeated calls inside a feature-major model, prefer
    autoencoder_forward_fm to skip the layout passes entirely.
    On v5e/v6e (128 MiB VMEM) target_tb can be raised to 131072 with a 64 MiB
    vmem_limit_bytes for a few extra % of roofline.
    """
    B, F = x.shape
    assert F == 7
    tb, b_pad, n = _choose_tiling(B, target_tb)

    # Single fused pad+transpose (no zeros + scatter): [B,7] -> [8, b_pad].
    xt = jnp.pad(x.astype(jnp.float32), ((0, b_pad - B), (0, FEAT_PAD - F))).T
    packed = pack_params(params)

    out_fm = _forward_core(xt, packed, tb, n)
    # Back to batch-major [B, 7]; never read the padded lanes (they carry bias values).
    return out_fm[:7, :B].T


def init_params(key):
    """Deterministic init matching the PyTorch module's layer shapes.
    torch Linear weight is (out, in); biases are (out,)."""
    ks = jax.random.split(key, 8)

    def linear(kw, kb, fan_in, fan_out):
        bound = 1.0 / jnp.sqrt(float(fan_in))
        w = jax.random.uniform(kw, (fan_out, fan_in), jnp.float32, -bound, bound)
        b = jax.random.uniform(kb, (fan_out,), jnp.float32, -bound, bound)
        return w, b

    w1, b1 = linear(ks[0], ks[1], 7, 4)   # encoder Hidden1
    w2, b2 = linear(ks[2], ks[3], 4, 2)   # encoder Hidden2
    w3, b3 = linear(ks[4], ks[5], 2, 4)   # decoder Hidden3
    w4, b4 = linear(ks[6], ks[7], 4, 7)   # decoder Hidden4
    return dict(w1=w1, b1=b1, w2=w2, b2=b2, w3=w3, b3=b3, w4=w4, b4=b4)


def reference_forward(x, p):
    """Pure-JAX reference of the unfused forward pass (full-precision dots)."""
    dot = functools.partial(jnp.dot, precision=jax.lax.Precision.HIGHEST)
    h1 = jnp.maximum(dot(x, p["w1"].T) + p["b1"], 0.0)
    z = dot(h1, p["w2"].T) + p["b2"]
    h3 = jnp.maximum(dot(z, p["w3"].T) + p["b3"], 0.0)
    return dot(h3, p["w4"].T) + p["b4"]


if __name__ == "__main__":
    key = jax.random.PRNGKey(0)
    k_x, k_x2, k_p = jax.random.split(key, 3)
    params = init_params(k_p)

    fwd = jax.jit(autoencoder_forward)

    # Small demo batch (single grid step).
    B = 8
    x = jax.random.normal(k_x, (B, 7), jnp.float32)
    out = jax.block_until_ready(fwd(x, params))
    ref = reference_forward(x, params)
    assert out.shape == (B, 7)
    assert jnp.allclose(out, ref, atol=1e-5, rtol=1e-5)

    # Multi-tile batch (exercises the >1-step "parallel" grid and batch padding).
    B2 = 300
    x2 = jax.random.normal(k_x2, (B2, 7), jnp.float32)
    out2 = jax.block_until_ready(fwd(x2, params))
    ref2 = reference_forward(x2, params)
    assert out2.shape == (B2, 7)
    assert jnp.allclose(out2, ref2, atol=1e-5, rtol=1e-5)

    print("KERNEL_OK")
</pallas_src>

<mosaic_0001>
module attributes {stable_mosaic.version = 11 : i64} {
  func.func @_autoencoder_kernel(%arg0: i32, %arg1: memref<8x128xf32, #tpu.memory_space<vmem>>, %arg2: memref<8x128xf32, #tpu.memory_space<vmem>>, %arg3: memref<8x128xf32, #tpu.memory_space<vmem>>) attributes {dimension_semantics = [#tpu.dimension_semantics<parallel>], iteration_bounds = array<i64: 1>, scalar_prefetch = 0 : i64, scratch_operands = 0 : i64, tpu.core_type = #tpu.core_type<tc>, window_params = [{transform_indices = @transform_0, window_bounds = array<i64: 8, 128>}, {pipeline_mode = #tpu.pipeline_mode<synchronous>, transform_indices = @transform_1, window_bounds = array<i64: 8, 128>}, {transform_indices = @transform_2, window_bounds = array<i64: 8, 128>}]} {
    %c0 = arith.constant 0 : index
    %c0_0 = arith.constant 0 : index
    %0 = vector.load %arg1[%c0, %c0_0] : memref<8x128xf32, #tpu.memory_space<vmem>>, vector<8x128xf32>
    %c0_1 = arith.constant 0 : index
    %c0_2 = arith.constant 0 : index
    %1 = vector.load %arg2[%c0_1, %c0_2] : memref<8x128xf32, #tpu.memory_space<vmem>>, vector<8x8xf32>
    %c0_3 = arith.constant 0 : index
    %c8 = arith.constant 8 : index
    %2 = vector.load %arg2[%c0_3, %c8] : memref<8x128xf32, #tpu.memory_space<vmem>>, vector<8x8xf32>
    %c0_4 = arith.constant 0 : index
    %c16 = arith.constant 16 : index
    %3 = vector.load %arg2[%c0_4, %c16] : memref<8x128xf32, #tpu.memory_space<vmem>>, vector<8x8xf32>
    %c0_5 = arith.constant 0 : index
    %c24 = arith.constant 24 : index
    %4 = vector.load %arg2[%c0_5, %c24] : memref<8x128xf32, #tpu.memory_space<vmem>>, vector<8x1xf32>
    %c0_6 = arith.constant 0 : index
    %c25 = arith.constant 25 : index
    %5 = vector.load %arg2[%c0_6, %c25] : memref<8x128xf32, #tpu.memory_space<vmem>>, vector<8x1xf32>
    %c0_7 = arith.constant 0 : index
    %c26 = arith.constant 26 : index
    %6 = vector.load %arg2[%c0_7, %c26] : memref<8x128xf32, #tpu.memory_space<vmem>>, vector<8x1xf32>
    %7 = vector.shape_cast %4 : vector<8x1xf32> to vector<8x1xf32>
    %8 = vector.broadcast %7 : vector<8x1xf32> to vector<8x128xf32>
    %9 = vector.extract_strided_slice %1 {offsets = [0, 0], sizes = [8, 1], strides = [1, 1]} : vector<8x8xf32> to vector<8x1xf32>
    %10 = vector.extract_strided_slice %0 {offsets = [0, 0], sizes = [1, 128], strides = [1, 1]} : vector<8x128xf32> to vector<1x128xf32>
    %11 = vector.broadcast %9 : vector<8x1xf32> to vector<8x128xf32>
    %12 = vector.broadcast %10 : vector<1x128xf32> to vector<8x128xf32>
    %13 = arith.mulf %11, %12 : vector<8x128xf32>
    %14 = arith.addf %8, %13 : vector<8x128xf32>
    %15 = vector.extract_strided_slice %1 {offsets = [0, 1], sizes = [8, 1], strides = [1, 1]} : vector<8x8xf32> to vector<8x1xf32>
    %16 = vector.extract_strided_slice %0 {offsets = [1, 0], sizes = [1, 128], strides = [1, 1]} : vector<8x128xf32> to vector<1x128xf32>
    %17 = vector.broadcast %15 : vector<8x1xf32> to vector<8x128xf32>
    %18 = vector.broadcast %16 : vector<1x128xf32> to vector<8x128xf32>
    %19 = arith.mulf %17, %18 : vector<8x128xf32>
    %20 = arith.addf %14, %19 : vector<8x128xf32>
    %21 = vector.extract_strided_slice %1 {offsets = [0, 2], sizes = [8, 1], strides = [1, 1]} : vector<8x8xf32> to vector<8x1xf32>
    %22 = vector.extract_strided_slice %0 {offsets = [2, 0], sizes = [1, 128], strides = [1, 1]} : vector<8x128xf32> to vector<1x128xf32>
    %23 = vector.broadcast %21 : vector<8x1xf32> to vector<8x128xf32>
    %24 = vector.broadcast %22 : vector<1x128xf32> to vector<8x128xf32>
    %25 = arith.mulf %23, %24 : vector<8x128xf32>
    %26 = arith.addf %20, %25 : vector<8x128xf32>
    %27 = vector.extract_strided_slice %1 {offsets = [0, 3], sizes = [8, 1], strides = [1, 1]} : vector<8x8xf32> to vector<8x1xf32>
    %28 = vector.extract_strided_slice %0 {offsets = [3, 0], sizes = [1, 128], strides = [1, 1]} : vector<8x128xf32> to vector<1x128xf32>
    %29 = vector.broadcast %27 : vector<8x1xf32> to vector<8x128xf32>
    %30 = vector.broadcast %28 : vector<1x128xf32> to vector<8x128xf32>
    %31 = arith.mulf %29, %30 : vector<8x128xf32>
    %32 = arith.addf %26, %31 : vector<8x128xf32>
    %33 = vector.extract_strided_slice %1 {offsets = [0, 4], sizes = [8, 1], strides = [1, 1]} : vector<8x8xf32> to vector<8x1xf32>
    %34 = vector.extract_strided_slice %0 {offsets = [4, 0], sizes = [1, 128], strides = [1, 1]} : vector<8x128xf32> to vector<1x128xf32>
    %35 = vector.broadcast %33 : vector<8x1xf32> to vector<8x128xf32>
    %36 = vector.broadcast %34 : vector<1x128xf32> to vector<8x128xf32>
    %37 = arith.mulf %35, %36 : vector<8x128xf32>
    %38 = arith.addf %32, %37 : vector<8x128xf32>
    %39 = vector.extract_strided_slice %1 {offsets = [0, 5], sizes = [8, 1], strides = [1, 1]} : vector<8x8xf32> to vector<8x1xf32>
    %40 = vector.extract_strided_slice %0 {offsets = [5, 0], sizes = [1, 128], strides = [1, 1]} : vector<8x128xf32> to vector<1x128xf32>
    %41 = vector.broadcast %39 : vector<8x1xf32> to vector<8x128xf32>
    %42 = vector.broadcast %40 : vector<1x128xf32> to vector<8x128xf32>
    %43 = arith.mulf %41, %42 : vector<8x128xf32>
    %44 = arith.addf %38, %43 : vector<8x128xf32>
    %45 = vector.extract_strided_slice %1 {offsets = [0, 6], sizes = [8, 1], strides = [1, 1]} : vector<8x8xf32> to vector<8x1xf32>
    %46 = vector.extract_strided_slice %0 {offsets = [6, 0], sizes = [1, 128], strides = [1, 1]} : vector<8x128xf32> to vector<1x128xf32>
    %47 = vector.broadcast %45 : vector<8x1xf32> to vector<8x128xf32>
    %48 = vector.broadcast %46 : vector<1x128xf32> to vector<8x128xf32>
    %49 = arith.mulf %47, %48 : vector<8x128xf32>
    %50 = arith.addf %44, %49 : vector<8x128xf32>
    %cst = arith.constant 0.000000e+00 : f32
    %51 = vector.broadcast %cst : f32 to vector<8x128xf32>
    %52 = arith.maximumf %50, %51 : vector<8x128xf32>
    %53 = vector.shape_cast %5 : vector<8x1xf32> to vector<8x1xf32>
    %54 = vector.broadcast %53 : vector<8x1xf32> to vector<8x128xf32>
    %55 = vector.extract_strided_slice %2 {offsets = [0, 0], sizes = [8, 1], strides = [1, 1]} : vector<8x8xf32> to vector<8x1xf32>
    %56 = vector.extract_strided_slice %52 {offsets = [0, 0], sizes = [1, 128], strides = [1, 1]} : vector<8x128xf32> to vector<1x128xf32>
    %57 = vector.broadcast %55 : vector<8x1xf32> to vector<8x128xf32>
    %58 = vector.broadcast %56 : vector<1x128xf32> to vector<8x128xf32>
    %59 = arith.mulf %57, %58 : vector<8x128xf32>
    %60 = arith.addf %54, %59 : vector<8x128xf32>
    %61 = vector.extract_strided_slice %2 {offsets = [0, 1], sizes = [8, 1], strides = [1, 1]} : vector<8x8xf32> to vector<8x1xf32>
    %62 = vector.extract_strided_slice %52 {offsets = [1, 0], sizes = [1, 128], strides = [1, 1]} : vector<8x128xf32> to vector<1x128xf32>
    %63 = vector.broadcast %61 : vector<8x1xf32> to vector<8x128xf32>
    %64 = vector.broadcast %62 : vector<1x128xf32> to vector<8x128xf32>
    %65 = arith.mulf %63, %64 : vector<8x128xf32>
    %66 = arith.addf %60, %65 : vector<8x128xf32>
    %67 = vector.extract_strided_slice %2 {offsets = [0, 2], sizes = [8, 1], strides = [1, 1]} : vector<8x8xf32> to vector<8x1xf32>
    %68 = vector.extract_strided_slice %52 {offsets = [2, 0], sizes = [1, 128], strides = [1, 1]} : vector<8x128xf32> to vector<1x128xf32>
    %69 = vector.broadcast %67 : vector<8x1xf32> to vector<8x128xf32>
    %70 = vector.broadcast %68 : vector<1x128xf32> to vector<8x128xf32>
    %71 = arith.mulf %69, %70 : vector<8x128xf32>
    %72 = arith.addf %66, %71 : vector<8x128xf32>
    %73 = vector.extract_strided_slice %2 {offsets = [0, 3], sizes = [8, 1], strides = [1, 1]} : vector<8x8xf32> to vector<8x1xf32>
    %74 = vector.extract_strided_slice %52 {offsets = [3, 0], sizes = [1, 128], strides = [1, 1]} : vector<8x128xf32> to vector<1x128xf32>
    %75 = vector.broadcast %73 : vector<8x1xf32> to vector<8x128xf32>
    %76 = vector.broadcast %74 : vector<1x128xf32> to vector<8x128xf32>
    %77 = arith.mulf %75, %76 : vector<8x128xf32>
    %78 = arith.addf %72, %77 : vector<8x128xf32>
    %cst_8 = arith.constant 0.000000e+00 : f32
    %79 = vector.broadcast %cst_8 : f32 to vector<8x128xf32>
    %80 = arith.maximumf %78, %79 : vector<8x128xf32>
    %81 = vector.shape_cast %6 : vector<8x1xf32> to vector<8x1xf32>
    %82 = vector.broadcast %81 : vector<8x1xf32> to vector<8x128xf32>
    %83 = vector.extract_strided_slice %3 {offsets = [0, 0], sizes = [8, 1], strides = [1, 1]} : vector<8x8xf32> to vector<8x1xf32>
    %84 = vector.extract_strided_slice %80 {offsets = [0, 0], sizes = [1, 128], strides = [1, 1]} : vector<8x128xf32> to vector<1x128xf32>
    %85 = vector.broadcast %83 : vector<8x1xf32> to vector<8x128xf32>
    %86 = vector.broadcast %84 : vector<1x128xf32> to vector<8x128xf32>
    %87 = arith.mulf %85, %86 : vector<8x128xf32>
    %88 = arith.addf %82, %87 : vector<8x128xf32>
    %89 = vector.extract_strided_slice %3 {offsets = [0, 1], sizes = [8, 1], strides = [1, 1]} : vector<8x8xf32> to vector<8x1xf32>
    %90 = vector.extract_strided_slice %80 {offsets = [1, 0], sizes = [1, 128], strides = [1, 1]} : vector<8x128xf32> to vector<1x128xf32>
    %91 = vector.broadcast %89 : vector<8x1xf32> to vector<8x128xf32>
    %92 = vector.broadcast %90 : vector<1x128xf32> to vector<8x128xf32>
    %93 = arith.mulf %91, %92 : vector<8x128xf32>
    %94 = arith.addf %88, %93 : vector<8x128xf32>
    %95 = vector.extract_strided_slice %3 {offsets = [0, 2], sizes = [8, 1], strides = [1, 1]} : vector<8x8xf32> to vector<8x1xf32>
    %96 = vector.extract_strided_slice %80 {offsets = [2, 0], sizes = [1, 128], strides = [1, 1]} : vector<8x128xf32> to vector<1x128xf32>
    %97 = vector.broadcast %95 : vector<8x1xf32> to vector<8x128xf32>
    %98 = vector.broadcast %96 : vector<1x128xf32> to vector<8x128xf32>
    %99 = arith.mulf %97, %98 : vector<8x128xf32>
    %100 = arith.addf %94, %99 : vector<8x128xf32>
    %101 = vector.extract_strided_slice %3 {offsets = [0, 3], sizes = [8, 1], strides = [1, 1]} : vector<8x8xf32> to vector<8x1xf32>
    %102 = vector.extract_strided_slice %80 {offsets = [3, 0], sizes = [1, 128], strides = [1, 1]} : vector<8x128xf32> to vector<1x128xf32>
    %103 = vector.broadcast %101 : vector<8x1xf32> to vector<8x128xf32>
    %104 = vector.broadcast %102 : vector<1x128xf32> to vector<8x128xf32>
    %105 = arith.mulf %103, %104 : vector<8x128xf32>
    %106 = arith.addf %100, %105 : vector<8x128xf32>
    %c0_9 = arith.constant 0 : index
    %c0_10 = arith.constant 0 : index
    %107 = vector.load %arg3[%c0_9, %c0_10] : memref<8x128xf32, #tpu.memory_space<vmem>>, vector<8x128xf32>
    tpu.vector_store %arg3[%c0_9, %c0_10], %106 {strides = array<i32>} : memref<8x128xf32, #tpu.memory_space<vmem>>, vector<8x128xf32>,
    return
  }
  func.func @transform_0(%arg0: i32) -> (i32, i32) {
    %c0_i32 = arith.constant 0 : i32
    %c0_i32_0 = arith.constant 0 : i32
    return %c0_i32, %arg0 : i32, i32
  }
  func.func @transform_1(%arg0: i32) -> (i32, i32) {
    %c0_i32 = arith.constant 0 : i32
    %c0_i32_0 = arith.constant 0 : i32
    %c0_i32_1 = arith.constant 0 : i32
    return %c0_i32, %c0_i32_0 : i32, i32
  }
  func.func @transform_2(%arg0: i32) -> (i32, i32) {
    %c0_i32 = arith.constant 0 : i32
    %c0_i32_0 = arith.constant 0 : i32
    return %c0_i32, %arg0 : i32, i32
  }
}

</mosaic_0001>

<bundles_post_ra>
// kernel: autoencoder_forward.1
= control target key start
LH: loop header
LB: loop body
LE: loop exit
PB: predicated region body
PF: predicated region fallthrough
CT: control target
= control target key end

     0   :  { %v219_v0 = vmov 1   ;;  %v220_v1 = vmov 0   ;;  %v221_v3 = vmov 2   ;;  %v222_v4 = vmov 24   ;;  %s266_s1 = inlined_call_operand.vmem [shape: f32[8,128], index: 1, kind: input, shape index: {}]   ;;  %s267_s0 = inlined_call_operand.vmem [shape: f32[8,128], index: 0, kind: input, shape index: {}]   ;;  %s268_s2 = inlined_call_operand.vmem [shape: f32[8,128], index: 2, kind: output, shape index: {}]  }
   0x1   :  { %203 = vset.pattern.permute.xlu1 %v219_v0  ;;  %201 = vset.pattern.permute.xlu0 %v220_v1  ;;  %v12_v2 = vld [vmem:[%s266_s1] sm:$0xff]  ;;  %v223_v5 = vmov 3   ;;  %v224_v6 = vmov 4   ;;  %v225_v7 = vmov 5   ;;  %v226_v8 = vmov 8  }
   0x2   :  { %29 = vperm.xlu1 %203, %v12_v2   ;;  %19 = vperm.xlu0 %201, %v12_v2   ;;  %v227_v9 = vmov 6   ;;  %v228_v10 = vmov 10   ;;  %v229_v11 = vmov 25   ;;  %v230_v12 = vmov 26   ;;  %v11_v22 = vld [vmem:[%s267_s0] sm:$0xff] }
   0x3   :  { %v231_v13 = vmov 9   ;;  %v232_v14 = vmov 19   ;;  %v233_v15 = vmov 11   ;;  %v234_v16 = vmov 16  }
   0x4   :  { %v235_v17 = vmov 17   ;;  %v236_v18 = vmov 18   ;;  %v22_v19 = vlaneseq }
   0x6   :  { %204 = vset.pattern.permute.xlu1 %v221_v3  ;;  %202 = vset.pattern.permute.xlu0 %v222_v4  ;;  %v23_v20 = vshrl.u32 %v22_v19, 7 }
   0x7   :  { %39 = vperm.xlu1 %204, %v12_v2   ;;  %15 = vperm.xlu0 %202, %v12_v2  }
   0x8   :  { %v24_v21 = vsub.s32 0, %v23_v20  ;;  %v34_v23 = vsub.s32 1, %v23_v20  ;;  %v258_v27 = vsub.s32 2, %v23_v20  ;;  %v54_v30 = vsub.s32 3, %v23_v20 }
   0x9   :  { %v64_v34 = vsub.s32 4, %v23_v20  ;;  %v74_v41 = vsub.s32 5, %v23_v20  ;;  %v84_v49 = vsub.s32 6, %v23_v20 }
   0xa   :  { %v25_v24 = vrot.slane %v11_v22, %v24_v21  ;;  %v35_v28 = vrot.slane %v11_v22, %v34_v23  ;;  %v45_v31 = vrot.slane %v11_v22, %v258_v27  ;;  %v55_v37 = vrot.slane %v11_v22, %v54_v30 }
   0xb   :  { %205 = vset.pattern.permute.xlu1 %v223_v5  ;;  %206 = vset.pattern.permute.xlu0 %v224_v6  ;;  %v65_v40 = vrot.slane %v11_v22, %v64_v34  ;;  %v75_v48 = vrot.slane %v11_v22, %v74_v41  ;;  %v85_v53 = vrot.slane %v11_v22, %v84_v49 }
   0xc   :  { %49 = vperm.xlu1 %205, %v12_v2   ;;  %59 = vperm.xlu0 %206, %v12_v2  }
  0x10   :  { %207 = vset.pattern.permute.xlu1 %v225_v7  ;;  %209 = vset.pattern.permute.xlu0 %v226_v8 }
  0x11   :  { %69 = vperm.xlu1 %207, %v12_v2   ;;  %94 = vperm.xlu0 %209, %v12_v2  }
  0x15   :  { %208 = vset.pattern.permute.xlu1 %v227_v9  ;;  %212 = vset.pattern.permute.xlu0 %v228_v10 }
  0x16   :  { %79 = vperm.xlu1 %208, %v12_v2   ;;  %114 = vperm.xlu0 %212, %v12_v2  }
  0x1a   :  { %210 = vset.pattern.permute.xlu1 %v229_v11  ;;  %215 = vset.pattern.permute.xlu0 %v230_v12 }
  0x1b   :  { %90 = vperm.xlu1 %210, %v12_v2   ;;  %135 = vperm.xlu0 %215, %v12_v2  }
  0x1f   :  { %211 = vset.pattern.permute.xlu1 %v231_v13  ;;  %218 = vset.pattern.permute.xlu0 %v232_v14 }
  0x20   :  { %104 = vperm.xlu1 %211, %v12_v2   ;;  %169 = vperm.xlu0 %218, %v12_v2  }
  0x24   :  { %213 = vset.pattern.permute.xlu1 %v233_v15 }
  0x25   :  { %124 = vperm.xlu1 %213, %v12_v2  }
  0x29   :  { %214 = vset.pattern.permute.xlu1 %v234_v16 }
  0x2a   :  { %139 = vperm.xlu1 %214, %v12_v2  }
  0x2e   :  { %216 = vset.pattern.permute.xlu1 %v235_v17 }
  0x2f   :  { %149 = vperm.xlu1 %216, %v12_v2  }
  0x33   :  { %217 = vset.pattern.permute.xlu1 %v236_v18 }
  0x34   :  { %159 = vperm.xlu1 %217, %v12_v2  }
  0x81   :  { %v30_v25 = vpop.permute.xlu1 %29  ;;  %v20_v26 = vpop.permute.xlu0 %19 }
  0x82   :  { %v26_v29 = vmul.f32 %v25_v24, %v20_v26  ;;  %v36_v35 = vmul.f32 %v35_v28, %v30_v25 }
  0x86   :  { %v40_v32 = vpop.permute.xlu1 %39  ;;  %v16_v33 = vpop.permute.xlu0 %15 }
  0x87   :  { %v27_v36 = vadd.f32 %v26_v29, %v16_v33  ;;  %v46_v38 = vmul.f32 %v45_v31, %v40_v32 }
  0x89   :  { %v37_v39 = vadd.f32 %v36_v35, %v27_v36 }
  0x8b   :  { %v50_v42 = vpop.permute.xlu1 %49  ;;  %v47_v43 = vadd.f32 %v46_v38, %v37_v39  ;;  %v60_v44 = vpop.permute.xlu0 %59 }
  0x8c   :  { %v56_v45 = vmul.f32 %v55_v37, %v50_v42  ;;  %v66_v47 = vmul.f32 %v65_v40, %v60_v44 }
  0x8e   :  { %v57_v46 = vadd.f32 %v56_v45, %v47_v43 }
  0x90   :  { %v70_v50 = vpop.permute.xlu1 %69  ;;  %v67_v51 = vadd.f32 %v66_v47, %v57_v46  ;;  %v95_v58 = vpop.permute.xlu0 %94 }
  0x91   :  { %v76_v52 = vmul.f32 %v75_v48, %v70_v50 }
  0x93   :  { %v77_v55 = vadd.f32 %v76_v52, %v67_v51 }
  0x95   :  { %v80_v54 = vpop.permute.xlu1 %79  ;;  %v115_v1 = vpop.permute.xlu0 %114 }
  0x96   :  { %v86_v56 = vmul.f32 %v85_v53, %v80_v54 }
  0x98   :  { %v87_v57 = vadd.f32 %v86_v56, %v77_v55 }
  0x9a   :  { %v88_v59 = vmax.f32 %v87_v57, 0.0  ;;  %v91_v60 = vpop.permute.xlu1 %90  ;;  %v136_v15 = vpop.permute.xlu0 %135 }
  0x9c   :  { %v100_v61 = vrot.slane %v88_v59, %v24_v21  ;;  %v120_v63 = vrot.slane %v88_v59, %v258_v27  ;;  %v110_v0 = vrot.slane %v88_v59, %v34_v23  ;;  %v130_v7 = vrot.slane %v88_v59, %v54_v30 }
  0x9e   :  { %v101_v62 = vmul.f32 %v100_v61, %v95_v58  ;;  %v121_v5 = vmul.f32 %v120_v63, %v115_v1 }
  0x9f   :  { %v105_v2 = vpop.permute.xlu1 %104  ;;  %v170_v25 = vpop.permute.xlu0 %169 }
  0xa0   :  { %v102_v3 = vadd.f32 %v101_v62, %v91_v60  ;;  %v111_v4 = vmul.f32 %v110_v0, %v105_v2 }
  0xa2   :  { %v112_v6 = vadd.f32 %v111_v4, %v102_v3 }
  0xa4   :  { %v125_v8 = vpop.permute.xlu1 %124  ;;  %v122_v9 = vadd.f32 %v121_v5, %v112_v6 }
  0xa5   :  { %v131_v10 = vmul.f32 %v130_v7, %v125_v8 }
  0xa7   :  { %v132_v11 = vadd.f32 %v131_v10, %v122_v9 }
  0xa9   :  { %v133_v12 = vmax.f32 %v132_v11, 0.0  ;;  %v140_v13 = vpop.permute.xlu1 %139 }
  0xab   :  { %v145_v14 = vrot.slane %v133_v12, %v24_v21  ;;  %v155_v18 = vrot.slane %v133_v12, %v34_v23  ;;  %v175_v22 = vrot.slane %v133_v12, %v54_v30  ;;  %v165_v24 = vrot.slane %v133_v12, %v258_v27 }
  0xad   :  { %v146_v16 = vmul.f32 %v145_v14, %v140_v13  ;;  %v176_v31 = vmul.f32 %v175_v22, %v170_v25 }
  0xae   :  { %v150_v17 = vpop.permute.xlu1 %149 }
  0xaf   :  { %v147_v19 = vadd.f32 %v146_v16, %v136_v15  ;;  %v156_v20 = vmul.f32 %v155_v18, %v150_v17 }
  0xb1   :  { %v157_v28 = vadd.f32 %v156_v20, %v147_v19 }
  0xb3   :  { %v160_v26 = vpop.permute.xlu1 %159 }
  0xb4   :  { %v166_v29 = vmul.f32 %v165_v24, %v160_v26 }
  0xb6   :  { %v167_v32 = vadd.f32 %v166_v29, %v157_v28 }
  0xb8   :  { %v177_v33 = vadd.f32 %v176_v31, %v167_v32 }
  0xba   :  { %178 = vst [vmem:[%s268_s2] sm:$0xff] %v177_v33 }

</bundles_post_ra>
